<compile_context>
chip_gen: v7x
topology: tpu7x:2x2x1
jax: 0.10.0
libtpu: 0.0.40
codegen_flags: <defaults>
</compile_context>

<pallas_src>
import math
import functools

import jax
import jax.numpy as jnp
from jax.experimental import pallas as pl
from jax.experimental.pallas import tpu as pltpu

INIT_RANGE = 0.02  # stands in for const.INIT_RANGE


# ----------------------------------------------------------------------------
# Fused kernel: QKV projection + per-head attention + fused output projection
#               + residual + LayerNorm (torch-style: unbiased std, clamp(eps)).
# ----------------------------------------------------------------------------
def _mha_fused_kernel(q_ref, k_ref, v_ref, mask_ref,
                      wq_ref, wk_ref, wv_ref, wo_ref, gamma_ref, beta_ref,
                      o_ref, *, n_head, d_k, d_model, eps):
    q = q_ref[0]                                   # [tq, d_model]     bf16
    k = k_ref[0]                                   # [len_k, d_model]  bf16
    v = v_ref[0]                                   # [len_k, d_model]  bf16

    # Additive mask bias computed ONCE (not per head): int8 {0,1} -> {0, -1e30}.
    bias = mask_ref[0].astype(jnp.float32) * jnp.float32(-1e30)   # [tq, len_k]

    # All-head projections: one lane-dense bf16 matmul each (1/sqrt(d_k) folded
    # into wq in the wrapper), f32 accumulation, then bf16 for downstream MXU ops.
    q_all = jnp.dot(q, wq_ref[...],
                    preferred_element_type=jnp.float32).astype(jnp.bfloat16)   # [tq, dh]
    k_all = jnp.dot(k, wk_ref[...],
                    preferred_element_type=jnp.float32).astype(jnp.bfloat16)   # [len_k, dh]
    v_all = jnp.dot(v, wv_ref[...],
                    preferred_element_type=jnp.float32).astype(jnp.bfloat16)   # [len_k, dh]

    # Accumulate the output projection per head (lane-dense N=d_model results),
    # starting from the residual (f32).
    y = q.astype(jnp.float32)                                                  # [tq, d_model]
    for h in range(n_head):                        # static unroll over heads
        lo = h * d_k
        q_h = q_all[:, lo:lo + d_k]                # [tq, d_k]      bf16
        k_h = k_all[:, lo:lo + d_k]                # [len_k, d_k]   bf16
        v_h = v_all[:, lo:lo + d_k]                # [len_k, d_k]   bf16

        # scores = q_h @ k_h^T without an explicit transpose.
        scores = jax.lax.dot_general(
            q_h, k_h,
            dimension_numbers=(((1,), (1,)), ((), ())),
            preferred_element_type=jnp.float32) + bias                         # [tq, len_k] f32

        # softmax over keys in f32 (matches torch.nn.Softmax(dim=-1)).
        m = jnp.max(scores, axis=-1, keepdims=True)
        p = jnp.exp(scores - m)
        s = jnp.sum(p, axis=-1, keepdims=True)
        attn = (p * pl.reciprocal(s, approx=True)).astype(jnp.bfloat16)
        # attention dropout: eval mode -> identity

        ctx_h = jnp.dot(attn, v_h, preferred_element_type=jnp.float32)         # [tq, d_k] f32
        # Fused output projection for this head (sublane row-slice of w_o^T).
        y = y + jnp.dot(ctx_h.astype(jnp.bfloat16), wo_ref[lo:lo + d_k, :],
                        preferred_element_type=jnp.float32)                    # [tq, d_model]

    # LayerNorm in f32: unbiased std, clamp at eps, divide (torch module semantics).
    mu = jnp.mean(y, axis=-1, keepdims=True)
    diff = y - mu
    var_u = jnp.sum(diff * diff, axis=-1, keepdims=True) / jnp.float32(d_model - 1)
    sigma = jnp.maximum(jnp.sqrt(var_u), jnp.float32(eps))
    out = diff / sigma * gamma_ref[...] + beta_ref[...]
    o_ref[0] = out.astype(o_ref.dtype)


# ----------------------------------------------------------------------------
# Helpers
# ----------------------------------------------------------------------------
def _q_tiling(len_q):
    """Return (padded_len_q, tq). Short sequences: one sublane-aligned tile.
    Long sequences: 256-wide tiles (full MXU M-dim, lane-dense stores), padding
    len_q up instead of falling back to tiny or whole-sequence tiles."""
    if len_q <= 512:
        padded = ((len_q + 7) // 8) * 8
        return padded, padded
    tq = 256
    padded = ((len_q + tq - 1) // tq) * tq
    return padded, tq


def _vmem_limit_bytes(tq, len_k, d_model, dh):
    """Explicit scoped-VMEM budget from the actual block + temp sizes (+headroom)."""
    bf, f32, i8 = 2, 4, 1
    blocks = (2 * tq * d_model * bf                    # q (double buffered)
              + 2 * tq * d_model * f32                 # out (double buffered)
              + 2 * tq * len_k * i8                    # mask (double buffered)
              + 2 * len_k * d_model * bf               # k + v (single buffered)
              + (3 * d_model * dh + dh * d_model) * bf # weights (single buffered)
              + 2 * d_model * f32)                     # gamma, beta
    temps = (3 * max(len_k, tq) * dh * f32             # q/k/v_all accumulators
             + 3 * tq * len_k * f32                    # bias + scores + exp(p)
             + 2 * tq * d_model * f32)                 # y accumulator + LN diff
    est = blocks + temps
    return min(max(2 * est + (4 << 20), 32 << 20), 100 << 20)


def _single_buffered(shape, index_map):
    """BlockSpec for grid-invariant / outer-axis-only inputs: single-buffer to
    halve their VMEM footprint (falls back to default if Buffered is absent)."""
    if hasattr(pl, "Buffered"):
        return pl.BlockSpec(shape, index_map, pipeline_mode=pl.Buffered(1))
    return pl.BlockSpec(shape, index_map)


# ----------------------------------------------------------------------------
# Parameter preprocessing: done ONCE at load time, not per forward call.
# ----------------------------------------------------------------------------
def prepare_params(params):
    n_head, d_model, d_k = params["w_qs"].shape
    dh = n_head * d_k  # == d_model for this module
    scale = 1.0 / math.sqrt(d_k)

    def stack(w, s=1.0):
        # [n_head, d_model, d_k] -> [d_model, n_head*d_k], cast to bf16.
        return ((jnp.transpose(w, (1, 0, 2)) * jnp.float32(s))
                .reshape(d_model, dh).astype(jnp.bfloat16))

    return {
        "wq": stack(params["w_qs"], scale),              # scale folded into wq
        "wk": stack(params["w_ks"]),
        "wv": stack(params["w_vs"]),
        "wo_t": params["w_o"].T.astype(jnp.bfloat16),    # Linear: y = x @ W.T
        "gamma": params["gamma"].reshape(1, d_model).astype(jnp.float32),
        "beta": params["beta"].reshape(1, d_model).astype(jnp.float32),
        "n_head": n_head, "d_model": d_model, "d_k": d_k, "dh": dh,
    }


# ----------------------------------------------------------------------------
# Wrapper
# ----------------------------------------------------------------------------
def multi_head_att(q, k, v, attn_mask, prepped):
    n_head = prepped["n_head"]
    d_model = prepped["d_model"]
    d_k = prepped["d_k"]
    dh = prepped["dh"]
    bsz, len_q, _ = q.shape
    len_k = k.shape[1]
    assert v.shape[1] == len_k, "len_v must equal len_k"

    q_bf = q.astype(jnp.bfloat16)
    k_bf = k.astype(jnp.bfloat16)
    v_bf = v.astype(jnp.bfloat16)
    mask_i8 = attn_mask.astype(jnp.int8)

    padded_len_q, tq = _q_tiling(len_q)
    pad_q = padded_len_q - len_q
    if pad_q:
        q_bf = jnp.pad(q_bf, ((0, 0), (0, pad_q), (0, 0)))
        mask_i8 = jnp.pad(mask_i8, ((0, 0), (0, pad_q), (0, 0)))  # padded rows unmasked
    n_qt = padded_len_q // tq

    kernel = functools.partial(
        _mha_fused_kernel, n_head=n_head, d_k=d_k, d_model=d_model, eps=1e-6)

    out = pl.pallas_call(
        kernel,
        out_shape=jax.ShapeDtypeStruct((bsz, padded_len_q, d_model), jnp.float32),
        grid_spec=pltpu.PrefetchScalarGridSpec(
            num_scalar_prefetch=0,
            grid=(bsz, n_qt),   # batch leads so v7x megacore splits evenly
            in_specs=[
                pl.BlockSpec((1, tq, d_model),    lambda b, i: (b, i, 0)),   # q / residual (bf16)
                _single_buffered((1, len_k, d_model), lambda b, i: (b, 0, 0)),  # k (bf16)
                _single_buffered((1, len_k, d_model), lambda b, i: (b, 0, 0)),  # v (bf16)
                pl.BlockSpec((1, tq, len_k),      lambda b, i: (b, i, 0)),   # mask (int8)
                _single_buffered((d_model, dh),   lambda b, i: (0, 0)),      # wq (scaled, stacked)
                _single_buffered((d_model, dh),   lambda b, i: (0, 0)),      # wk (stacked)
                _single_buffered((d_model, dh),   lambda b, i: (0, 0)),      # wv (stacked)
                _single_buffered((dh, d_model),   lambda b, i: (0, 0)),      # w_o^T
                _single_buffered((1, d_model),    lambda b, i: (0, 0)),      # gamma
                _single_buffered((1, d_model),    lambda b, i: (0, 0)),      # beta
            ],
            out_specs=pl.BlockSpec((1, tq, d_model), lambda b, i: (b, i, 0)),
        ),
        compiler_params=pltpu.CompilerParams(
            dimension_semantics=("parallel", "parallel"),
            vmem_limit_bytes=_vmem_limit_bytes(tq, len_k, d_model, dh)),
    )(q_bf, k_bf, v_bf, mask_i8,
      prepped["wq"], prepped["wk"], prepped["wv"], prepped["wo_t"],
      prepped["gamma"], prepped["beta"])

    if pad_q:
        out = out[:, :len_q]
    return out


# ----------------------------------------------------------------------------
# Pure-JAX reference (mirrors the torch forward, eval mode) for verification.
# ----------------------------------------------------------------------------
def multi_head_att_ref(q, k, v, attn_mask, params):
    n_head, d_model, d_k = params["w_qs"].shape
    bsz, len_q, _ = q.shape
    q_s = jnp.einsum("bld,hdk->hblk", q, params["w_qs"])
    k_s = jnp.einsum("bld,hdk->hblk", k, params["w_ks"])
    v_s = jnp.einsum("bld,hdk->hblk", v, params["w_vs"])
    scores = jnp.einsum("hbqk,hbmk->hbqm", q_s, k_s) / jnp.sqrt(jnp.float32(d_k))
    scores = jnp.where(attn_mask[None], -jnp.inf, scores)
    attn = jax.nn.softmax(scores, axis=-1)
    out = jnp.einsum("hbqm,hbmk->hbqk", attn, v_s)          # [h,b,q,d_k]
    out = jnp.transpose(out, (1, 2, 0, 3)).reshape(bsz, len_q, d_model)
    out = out @ params["w_o"].T + q
    mu = jnp.mean(out, axis=-1, keepdims=True)
    diff = out - mu
    sigma = jnp.sqrt(jnp.sum(diff * diff, -1, keepdims=True) / (d_model - 1))
    sigma = jnp.maximum(sigma, 1e-6)
    return diff / sigma * params["gamma"] + params["beta"]


if __name__ == "__main__":
    key = jax.random.PRNGKey(0)
    n_head, d_model = 4, 32
    d_k = d_model // n_head
    bsz, seq = 2, 8

    ks = jax.random.split(key, 7)
    params = {
        "w_qs": jax.random.normal(ks[0], (n_head, d_model, d_k), jnp.float32) * INIT_RANGE,
        "w_ks": jax.random.normal(ks[1], (n_head, d_model, d_k), jnp.float32) * INIT_RANGE,
        "w_vs": jax.random.normal(ks[2], (n_head, d_model, d_k), jnp.float32) * INIT_RANGE,
        "w_o": jax.random.normal(ks[3], (d_model, d_model), jnp.float32) * 0.1,
        "gamma": jnp.ones((d_model,), jnp.float32),
        "beta": jnp.zeros((d_model,), jnp.float32),
    }
    prepped = prepare_params(params)   # one-time preprocessing (not per call)

    q = jax.random.normal(ks[4], (bsz, seq, d_model), jnp.float32)
    k = jax.random.normal(ks[5], (bsz, seq, d_model), jnp.float32)
    v = jax.random.normal(ks[6], (bsz, seq, d_model), jnp.float32)
    # mask out the last key position everywhere (no row fully masked)
    attn_mask = jnp.zeros((bsz, seq, seq), jnp.bool_).at[:, :, seq - 1].set(True)

    out = multi_head_att(q, k, v, attn_mask, prepped)
    out = jax.block_until_ready(out)

    ref = multi_head_att_ref(q, k, v, attn_mask, params)
    assert out.shape == (bsz, seq, d_model)
    # bf16 MXU operands + approx reciprocal -> compare at bf16-appropriate tolerance.
    assert jnp.allclose(out, ref, atol=2e-2, rtol=2e-2), "mismatch vs JAX reference"

    print("KERNEL_OK")
</pallas_src>

<mosaic_0001>
module attributes {stable_mosaic.version = 11 : i64} {
  func.func @_mha_fused_kernel(%arg0: i32, %arg1: i32, %arg2: memref<1x8x32xbf16, #tpu.memory_space<vmem>>, %arg3: memref<1x8x32xbf16, #tpu.memory_space<vmem>>, %arg4: memref<1x8x32xbf16, #tpu.memory_space<vmem>>, %arg5: memref<1x8x8xi8, #tpu.memory_space<vmem>>, %arg6: memref<32x32xbf16, #tpu.memory_space<vmem>>, %arg7: memref<32x32xbf16, #tpu.memory_space<vmem>>, %arg8: memref<32x32xbf16, #tpu.memory_space<vmem>>, %arg9: memref<32x32xbf16, #tpu.memory_space<vmem>>, %arg10: memref<1x32xf32, #tpu.memory_space<vmem>>, %arg11: memref<1x32xf32, #tpu.memory_space<vmem>>, %arg12: memref<1x8x32xf32, #tpu.memory_space<vmem>>) attributes {dimension_semantics = [#tpu.dimension_semantics<parallel>, #tpu.dimension_semantics<parallel>], iteration_bounds = array<i64: 2, 1>, scalar_prefetch = 0 : i64, scratch_operands = 0 : i64, tpu.core_type = #tpu.core_type<tc>, window_params = [{transform_indices = @transform_0, window_bounds = array<i64: 1, 8, 32>}, {pipeline_mode = #tpu.pipeline_mode<synchronous>, transform_indices = @transform_1, window_bounds = array<i64: 1, 8, 32>}, {pipeline_mode = #tpu.pipeline_mode<synchronous>, transform_indices = @transform_2, window_bounds = array<i64: 1, 8, 32>}, {transform_indices = @transform_3, window_bounds = array<i64: 1, 8, 8>}, {pipeline_mode = #tpu.pipeline_mode<synchronous>, transform_indices = @transform_4, window_bounds = array<i64: 32, 32>}, {pipeline_mode = #tpu.pipeline_mode<synchronous>, transform_indices = @transform_5, window_bounds = array<i64: 32, 32>}, {pipeline_mode = #tpu.pipeline_mode<synchronous>, transform_indices = @transform_6, window_bounds = array<i64: 32, 32>}, {pipeline_mode = #tpu.pipeline_mode<synchronous>, transform_indices = @transform_7, window_bounds = array<i64: 32, 32>}, {pipeline_mode = #tpu.pipeline_mode<synchronous>, transform_indices = @transform_8, window_bounds = array<i64: 1, 32>}, {pipeline_mode = #tpu.pipeline_mode<synchronous>, transform_indices = @transform_9, window_bounds = array<i64: 1, 32>}, {transform_indices = @transform_10, window_bounds = array<i64: 1, 8, 32>}]} {
    %c0 = arith.constant 0 : index
    %c0_0 = arith.constant 0 : index
    %c0_1 = arith.constant 0 : index
    %0 = vector.load %arg2[%c0, %c0_0, %c0_1] : memref<1x8x32xbf16, #tpu.memory_space<vmem>>, vector<1x8x32xbf16>
    %1 = vector.shape_cast %0 : vector<1x8x32xbf16> to vector<8x32xbf16>
    %c0_2 = arith.constant 0 : index
    %c0_3 = arith.constant 0 : index
    %c0_4 = arith.constant 0 : index
    %2 = vector.load %arg3[%c0_2, %c0_3, %c0_4] : memref<1x8x32xbf16, #tpu.memory_space<vmem>>, vector<1x8x32xbf16>
    %3 = vector.shape_cast %2 : vector<1x8x32xbf16> to vector<8x32xbf16>
    %c0_5 = arith.constant 0 : index
    %c0_6 = arith.constant 0 : index
    %c0_7 = arith.constant 0 : index
    %4 = vector.load %arg4[%c0_5, %c0_6, %c0_7] : memref<1x8x32xbf16, #tpu.memory_space<vmem>>, vector<1x8x32xbf16>
    %5 = vector.shape_cast %4 : vector<1x8x32xbf16> to vector<8x32xbf16>
    %c0_8 = arith.constant 0 : index
    %c0_9 = arith.constant 0 : index
    %c0_10 = arith.constant 0 : index
    %6 = vector.load %arg5[%c0_8, %c0_9, %c0_10] : memref<1x8x8xi8, #tpu.memory_space<vmem>>, vector<1x8x8xi8>
    %7 = vector.shape_cast %6 : vector<1x8x8xi8> to vector<8x8xi8>
    %8 = arith.sitofp %7 : vector<8x8xi8> to vector<8x8xf32>
    %cst = arith.constant -1.000000e+30 : f32
    %9 = vector.broadcast %cst : f32 to vector<8x8xf32>
    %10 = arith.mulf %8, %9 : vector<8x8xf32>
    %c0_11 = arith.constant 0 : index
    %c0_12 = arith.constant 0 : index
    %11 = vector.load %arg6[%c0_11, %c0_12] : memref<32x32xbf16, #tpu.memory_space<vmem>>, vector<32x32xbf16>
    %cst_13 = arith.constant dense<0.000000e+00> : vector<8x32xf32>
    %12 = tpu.matmul %1, %11, %cst_13 {dimension_numbers = #tpu.dot_dimension_numbers<[1], [0], [0], [1], [0, 0, 1, 1], [], []>} : vector<8x32xbf16>, vector<32x32xbf16>, vector<8x32xf32> -> vector<8x32xf32>
    %13 = arith.truncf %12 : vector<8x32xf32> to vector<8x32xbf16>
    %c0_14 = arith.constant 0 : index
    %c0_15 = arith.constant 0 : index
    %14 = vector.load %arg7[%c0_14, %c0_15] : memref<32x32xbf16, #tpu.memory_space<vmem>>, vector<32x32xbf16>
    %cst_16 = arith.constant dense<0.000000e+00> : vector<8x32xf32>
    %15 = tpu.matmul %3, %14, %cst_16 {dimension_numbers = #tpu.dot_dimension_numbers<[1], [0], [0], [1], [0, 0, 1, 1], [], []>} : vector<8x32xbf16>, vector<32x32xbf16>, vector<8x32xf32> -> vector<8x32xf32>
    %16 = arith.truncf %15 : vector<8x32xf32> to vector<8x32xbf16>
    %c0_17 = arith.constant 0 : index
    %c0_18 = arith.constant 0 : index
    %17 = vector.load %arg8[%c0_17, %c0_18] : memref<32x32xbf16, #tpu.memory_space<vmem>>, vector<32x32xbf16>
    %cst_19 = arith.constant dense<0.000000e+00> : vector<8x32xf32>
    %18 = tpu.matmul %5, %17, %cst_19 {dimension_numbers = #tpu.dot_dimension_numbers<[1], [0], [0], [1], [0, 0, 1, 1], [], []>} : vector<8x32xbf16>, vector<32x32xbf16>, vector<8x32xf32> -> vector<8x32xf32>
    %19 = arith.truncf %18 : vector<8x32xf32> to vector<8x32xbf16>
    %20 = arith.extf %1 : vector<8x32xbf16> to vector<8x32xf32>
    %21 = vector.extract_strided_slice %13 {offsets = [0, 0], sizes = [8, 8], strides = [1, 1]} : vector<8x32xbf16> to vector<8x8xbf16>
    %22 = vector.extract_strided_slice %16 {offsets = [0, 0], sizes = [8, 8], strides = [1, 1]} : vector<8x32xbf16> to vector<8x8xbf16>
    %23 = vector.extract_strided_slice %19 {offsets = [0, 0], sizes = [8, 8], strides = [1, 1]} : vector<8x32xbf16> to vector<8x8xbf16>
    %cst_20 = arith.constant dense<0.000000e+00> : vector<8x8xf32>
    %24 = tpu.matmul %21, %22, %cst_20 {dimension_numbers = #tpu.dot_dimension_numbers<[1], [1], [0], [0], [0, 0, 1, 0], [], []>} : vector<8x8xbf16>, vector<8x8xbf16>, vector<8x8xf32> -> vector<8x8xf32>
    %25 = arith.addf %24, %10 : vector<8x8xf32>
    %cst_21 = arith.constant dense<0xFF800000> : vector<8xf32>
    %26 = vector.multi_reduction <maximumf>, %25, %cst_21 [1] : vector<8x8xf32> to vector<8xf32>
    %27 = vector.shape_cast %26 : vector<8xf32> to vector<8x1xf32>
    %28 = vector.broadcast %27 : vector<8x1xf32> to vector<8x8xf32>
    %29 = arith.subf %25, %28 : vector<8x8xf32>
    %30 = math.exp %29 : vector<8x8xf32>
    %cst_22 = arith.constant dense<0.000000e+00> : vector<8xf32>
    %31 = vector.multi_reduction <add>, %30, %cst_22 [1] : vector<8x8xf32> to vector<8xf32>
    %32 = vector.shape_cast %31 : vector<8xf32> to vector<8x1xf32>
    %33 = tpu.reciprocal %32 {approx = true} : vector<8x1xf32> -> vector<8x1xf32>
    %34 = vector.broadcast %33 : vector<8x1xf32> to vector<8x8xf32>
    %35 = arith.mulf %30, %34 : vector<8x8xf32>
    %36 = arith.truncf %35 : vector<8x8xf32> to vector<8x8xbf16>
    %cst_23 = arith.constant dense<0.000000e+00> : vector<8x8xf32>
    %37 = tpu.matmul %36, %23, %cst_23 {dimension_numbers = #tpu.dot_dimension_numbers<[1], [0], [0], [1], [0, 0, 1, 1], [], []>} : vector<8x8xbf16>, vector<8x8xbf16>, vector<8x8xf32> -> vector<8x8xf32>
    %38 = arith.truncf %37 : vector<8x8xf32> to vector<8x8xbf16>
    %c0_24 = arith.constant 0 : index
    %c0_25 = arith.constant 0 : index
    %39 = vector.load %arg9[%c0_24, %c0_25] : memref<32x32xbf16, #tpu.memory_space<vmem>>, vector<8x32xbf16>
    %cst_26 = arith.constant dense<0.000000e+00> : vector<8x32xf32>
    %40 = tpu.matmul %38, %39, %cst_26 {dimension_numbers = #tpu.dot_dimension_numbers<[1], [0], [0], [1], [0, 0, 1, 1], [], []>} : vector<8x8xbf16>, vector<8x32xbf16>, vector<8x32xf32> -> vector<8x32xf32>
    %41 = arith.addf %20, %40 : vector<8x32xf32>
    %42 = vector.extract_strided_slice %13 {offsets = [0, 8], sizes = [8, 8], strides = [1, 1]} : vector<8x32xbf16> to vector<8x8xbf16>
    %43 = vector.extract_strided_slice %16 {offsets = [0, 8], sizes = [8, 8], strides = [1, 1]} : vector<8x32xbf16> to vector<8x8xbf16>
    %44 = vector.extract_strided_slice %19 {offsets = [0, 8], sizes = [8, 8], strides = [1, 1]} : vector<8x32xbf16> to vector<8x8xbf16>
    %cst_27 = arith.constant dense<0.000000e+00> : vector<8x8xf32>
    %45 = tpu.matmul %42, %43, %cst_27 {dimension_numbers = #tpu.dot_dimension_numbers<[1], [1], [0], [0], [0, 0, 1, 0], [], []>} : vector<8x8xbf16>, vector<8x8xbf16>, vector<8x8xf32> -> vector<8x8xf32>
    %46 = arith.addf %45, %10 : vector<8x8xf32>
    %cst_28 = arith.constant dense<0xFF800000> : vector<8xf32>
    %47 = vector.multi_reduction <maximumf>, %46, %cst_28 [1] : vector<8x8xf32> to vector<8xf32>
    %48 = vector.shape_cast %47 : vector<8xf32> to vector<8x1xf32>
    %49 = vector.broadcast %48 : vector<8x1xf32> to vector<8x8xf32>
    %50 = arith.subf %46, %49 : vector<8x8xf32>
    %51 = math.exp %50 : vector<8x8xf32>
    %cst_29 = arith.constant dense<0.000000e+00> : vector<8xf32>
    %52 = vector.multi_reduction <add>, %51, %cst_29 [1] : vector<8x8xf32> to vector<8xf32>
    %53 = vector.shape_cast %52 : vector<8xf32> to vector<8x1xf32>
    %54 = tpu.reciprocal %53 {approx = true} : vector<8x1xf32> -> vector<8x1xf32>
    %55 = vector.broadcast %54 : vector<8x1xf32> to vector<8x8xf32>
    %56 = arith.mulf %51, %55 : vector<8x8xf32>
    %57 = arith.truncf %56 : vector<8x8xf32> to vector<8x8xbf16>
    %cst_30 = arith.constant dense<0.000000e+00> : vector<8x8xf32>
    %58 = tpu.matmul %57, %44, %cst_30 {dimension_numbers = #tpu.dot_dimension_numbers<[1], [0], [0], [1], [0, 0, 1, 1], [], []>} : vector<8x8xbf16>, vector<8x8xbf16>, vector<8x8xf32> -> vector<8x8xf32>
    %59 = arith.truncf %58 : vector<8x8xf32> to vector<8x8xbf16>
    %c8 = arith.constant 8 : index
    %c0_31 = arith.constant 0 : index
    %60 = vector.load %arg9[%c8, %c0_31] : memref<32x32xbf16, #tpu.memory_space<vmem>>, vector<8x32xbf16>
    %cst_32 = arith.constant dense<0.000000e+00> : vector<8x32xf32>
    %61 = tpu.matmul %59, %60, %cst_32 {dimension_numbers = #tpu.dot_dimension_numbers<[1], [0], [0], [1], [0, 0, 1, 1], [], []>} : vector<8x8xbf16>, vector<8x32xbf16>, vector<8x32xf32> -> vector<8x32xf32>
    %62 = arith.addf %41, %61 : vector<8x32xf32>
    %63 = vector.extract_strided_slice %13 {offsets = [0, 16], sizes = [8, 8], strides = [1, 1]} : vector<8x32xbf16> to vector<8x8xbf16>
    %64 = vector.extract_strided_slice %16 {offsets = [0, 16], sizes = [8, 8], strides = [1, 1]} : vector<8x32xbf16> to vector<8x8xbf16>
    %65 = vector.extract_strided_slice %19 {offsets = [0, 16], sizes = [8, 8], strides = [1, 1]} : vector<8x32xbf16> to vector<8x8xbf16>
    %cst_33 = arith.constant dense<0.000000e+00> : vector<8x8xf32>
    %66 = tpu.matmul %63, %64, %cst_33 {dimension_numbers = #tpu.dot_dimension_numbers<[1], [1], [0], [0], [0, 0, 1, 0], [], []>} : vector<8x8xbf16>, vector<8x8xbf16>, vector<8x8xf32> -> vector<8x8xf32>
    %67 = arith.addf %66, %10 : vector<8x8xf32>
    %cst_34 = arith.constant dense<0xFF800000> : vector<8xf32>
    %68 = vector.multi_reduction <maximumf>, %67, %cst_34 [1] : vector<8x8xf32> to vector<8xf32>
    %69 = vector.shape_cast %68 : vector<8xf32> to vector<8x1xf32>
    %70 = vector.broadcast %69 : vector<8x1xf32> to vector<8x8xf32>
    %71 = arith.subf %67, %70 : vector<8x8xf32>
    %72 = math.exp %71 : vector<8x8xf32>
    %cst_35 = arith.constant dense<0.000000e+00> : vector<8xf32>
    %73 = vector.multi_reduction <add>, %72, %cst_35 [1] : vector<8x8xf32> to vector<8xf32>
    %74 = vector.shape_cast %73 : vector<8xf32> to vector<8x1xf32>
    %75 = tpu.reciprocal %74 {approx = true} : vector<8x1xf32> -> vector<8x1xf32>
    %76 = vector.broadcast %75 : vector<8x1xf32> to vector<8x8xf32>
    %77 = arith.mulf %72, %76 : vector<8x8xf32>
    %78 = arith.truncf %77 : vector<8x8xf32> to vector<8x8xbf16>
    %cst_36 = arith.constant dense<0.000000e+00> : vector<8x8xf32>
    %79 = tpu.matmul %78, %65, %cst_36 {dimension_numbers = #tpu.dot_dimension_numbers<[1], [0], [0], [1], [0, 0, 1, 1], [], []>} : vector<8x8xbf16>, vector<8x8xbf16>, vector<8x8xf32> -> vector<8x8xf32>
    %80 = arith.truncf %79 : vector<8x8xf32> to vector<8x8xbf16>
    %c16 = arith.constant 16 : index
    %c0_37 = arith.constant 0 : index
    %81 = vector.load %arg9[%c16, %c0_37] : memref<32x32xbf16, #tpu.memory_space<vmem>>, vector<8x32xbf16>
    %cst_38 = arith.constant dense<0.000000e+00> : vector<8x32xf32>
    %82 = tpu.matmul %80, %81, %cst_38 {dimension_numbers = #tpu.dot_dimension_numbers<[1], [0], [0], [1], [0, 0, 1, 1], [], []>} : vector<8x8xbf16>, vector<8x32xbf16>, vector<8x32xf32> -> vector<8x32xf32>
    %83 = arith.addf %62, %82 : vector<8x32xf32>
    %84 = vector.extract_strided_slice %13 {offsets = [0, 24], sizes = [8, 8], strides = [1, 1]} : vector<8x32xbf16> to vector<8x8xbf16>
    %85 = vector.extract_strided_slice %16 {offsets = [0, 24], sizes = [8, 8], strides = [1, 1]} : vector<8x32xbf16> to vector<8x8xbf16>
    %86 = vector.extract_strided_slice %19 {offsets = [0, 24], sizes = [8, 8], strides = [1, 1]} : vector<8x32xbf16> to vector<8x8xbf16>
    %cst_39 = arith.constant dense<0.000000e+00> : vector<8x8xf32>
    %87 = tpu.matmul %84, %85, %cst_39 {dimension_numbers = #tpu.dot_dimension_numbers<[1], [1], [0], [0], [0, 0, 1, 0], [], []>} : vector<8x8xbf16>, vector<8x8xbf16>, vector<8x8xf32> -> vector<8x8xf32>
    %88 = arith.addf %87, %10 : vector<8x8xf32>
    %cst_40 = arith.constant dense<0xFF800000> : vector<8xf32>
    %89 = vector.multi_reduction <maximumf>, %88, %cst_40 [1] : vector<8x8xf32> to vector<8xf32>
    %90 = vector.shape_cast %89 : vector<8xf32> to vector<8x1xf32>
    %91 = vector.broadcast %90 : vector<8x1xf32> to vector<8x8xf32>
    %92 = arith.subf %88, %91 : vector<8x8xf32>
    %93 = math.exp %92 : vector<8x8xf32>
    %cst_41 = arith.constant dense<0.000000e+00> : vector<8xf32>
    %94 = vector.multi_reduction <add>, %93, %cst_41 [1] : vector<8x8xf32> to vector<8xf32>
    %95 = vector.shape_cast %94 : vector<8xf32> to vector<8x1xf32>
    %96 = tpu.reciprocal %95 {approx = true} : vector<8x1xf32> -> vector<8x1xf32>
    %97 = vector.broadcast %96 : vector<8x1xf32> to vector<8x8xf32>
    %98 = arith.mulf %93, %97 : vector<8x8xf32>
    %99 = arith.truncf %98 : vector<8x8xf32> to vector<8x8xbf16>
    %cst_42 = arith.constant dense<0.000000e+00> : vector<8x8xf32>
    %100 = tpu.matmul %99, %86, %cst_42 {dimension_numbers = #tpu.dot_dimension_numbers<[1], [0], [0], [1], [0, 0, 1, 1], [], []>} : vector<8x8xbf16>, vector<8x8xbf16>, vector<8x8xf32> -> vector<8x8xf32>
    %101 = arith.truncf %100 : vector<8x8xf32> to vector<8x8xbf16>
    %c24 = arith.constant 24 : index
    %c0_43 = arith.constant 0 : index
    %102 = vector.load %arg9[%c24, %c0_43] : memref<32x32xbf16, #tpu.memory_space<vmem>>, vector<8x32xbf16>
    %cst_44 = arith.constant dense<0.000000e+00> : vector<8x32xf32>
    %103 = tpu.matmul %101, %102, %cst_44 {dimension_numbers = #tpu.dot_dimension_numbers<[1], [0], [0], [1], [0, 0, 1, 1], [], []>} : vector<8x8xbf16>, vector<8x32xbf16>, vector<8x32xf32> -> vector<8x32xf32>
    %104 = arith.addf %83, %103 : vector<8x32xf32>
    %cst_45 = arith.constant dense<0.000000e+00> : vector<8xf32>
    %105 = vector.multi_reduction <add>, %104, %cst_45 [1] : vector<8x32xf32> to vector<8xf32>
    %106 = vector.shape_cast %105 : vector<8xf32> to vector<8x1xf32>
    %cst_46 = arith.constant 3.200000e+01 : f32
    %107 = vector.broadcast %cst_46 : f32 to vector<8x1xf32>
    %108 = arith.divf %106, %107 : vector<8x1xf32>
    %109 = vector.broadcast %108 : vector<8x1xf32> to vector<8x32xf32>
    %110 = arith.subf %104, %109 : vector<8x32xf32>
    %111 = arith.mulf %110, %110 : vector<8x32xf32>
    %cst_47 = arith.constant dense<0.000000e+00> : vector<8xf32>
    %112 = vector.multi_reduction <add>, %111, %cst_47 [1] : vector<8x32xf32> to vector<8xf32>
    %113 = vector.shape_cast %112 : vector<8xf32> to vector<8x1xf32>
    %cst_48 = arith.constant 3.100000e+01 : f32
    %114 = vector.broadcast %cst_48 : f32 to vector<8x1xf32>
    %115 = arith.divf %113, %114 : vector<8x1xf32>
    %116 = math.sqrt %115 : vector<8x1xf32>
    %cst_49 = arith.constant 9.99999997E-7 : f32
    %117 = vector.broadcast %cst_49 : f32 to vector<8x1xf32>
    %118 = arith.maximumf %116, %117 : vector<8x1xf32>
    %119 = vector.broadcast %118 : vector<8x1xf32> to vector<8x32xf32>
    %120 = arith.divf %110, %119 : vector<8x32xf32>
    %c0_50 = arith.constant 0 : index
    %c0_51 = arith.constant 0 : index
    %121 = vector.load %arg10[%c0_50, %c0_51] : memref<1x32xf32, #tpu.memory_space<vmem>>, vector<1x32xf32>
    %122 = vector.broadcast %121 : vector<1x32xf32> to vector<8x32xf32>
    %123 = arith.mulf %120, %122 : vector<8x32xf32>
    %c0_52 = arith.constant 0 : index
    %c0_53 = arith.constant 0 : index
    %124 = vector.load %arg11[%c0_52, %c0_53] : memref<1x32xf32, #tpu.memory_space<vmem>>, vector<1x32xf32>
    %125 = vector.broadcast %124 : vector<1x32xf32> to vector<8x32xf32>
    %126 = arith.addf %123, %125 : vector<8x32xf32>
    %c0_54 = arith.constant 0 : index
    %c0_55 = arith.constant 0 : index
    %c0_56 = arith.constant 0 : index
    %127 = vector.load %arg12[%c0_54, %c0_55, %c0_56] : memref<1x8x32xf32, #tpu.memory_space<vmem>>, vector<1x8x32xf32>
    %128 = vector.shape_cast %127 : vector<1x8x32xf32> to vector<8x32xf32>
    %129 = vector.shape_cast %126 : vector<8x32xf32> to vector<1x8x32xf32>
    tpu.vector_store %arg12[%c0_54, %c0_55, %c0_56], %129 {strides = array<i32>} : memref<1x8x32xf32, #tpu.memory_space<vmem>>, vector<1x8x32xf32>,
    return
  }
  func.func @transform_0(%arg0: i32, %arg1: i32) -> (i32, i32, i32) {
    %c0_i32 = arith.constant 0 : i32
    %c0_i32_0 = arith.constant 0 : i32
    return %arg0, %arg1, %c0_i32 : i32, i32, i32
  }
  func.func @transform_1(%arg0: i32, %arg1: i32) -> (i32, i32, i32) {
    %c0_i32 = arith.constant 0 : i32
    %c0_i32_0 = arith.constant 0 : i32
    %c0_i32_1 = arith.constant 0 : i32
    return %arg0, %c0_i32, %c0_i32_0 : i32, i32, i32
  }
  func.func @transform_2(%arg0: i32, %arg1: i32) -> (i32, i32, i32) {
    %c0_i32 = arith.constant 0 : i32
    %c0_i32_0 = arith.constant 0 : i32
    %c0_i32_1 = arith.constant 0 : i32
    return %arg0, %c0_i32, %c0_i32_0 : i32, i32, i32
  }
  func.func @transform_3(%arg0: i32, %arg1: i32) -> (i32, i32, i32) {
    %c0_i32 = arith.constant 0 : i32
    %c0_i32_0 = arith.constant 0 : i32
    return %arg0, %arg1, %c0_i32 : i32, i32, i32
  }
  func.func @transform_4(%arg0: i32, %arg1: i32) -> (i32, i32) {
    %c0_i32 = arith.constant 0 : i32
    %c0_i32_0 = arith.constant 0 : i32
    %c0_i32_1 = arith.constant 0 : i32
    return %c0_i32, %c0_i32_0 : i32, i32
  }
  func.func @transform_5(%arg0: i32, %arg1: i32) -> (i32, i32) {
    %c0_i32 = arith.constant 0 : i32
    %c0_i32_0 = arith.constant 0 : i32
    %c0_i32_1 = arith.constant 0 : i32
    return %c0_i32, %c0_i32_0 : i32, i32
  }
  func.func @transform_6(%arg0: i32, %arg1: i32) -> (i32, i32) {
    %c0_i32 = arith.constant 0 : i32
    %c0_i32_0 = arith.constant 0 : i32
    %c0_i32_1 = arith.constant 0 : i32
    return %c0_i32, %c0_i32_0 : i32, i32
  }
  func.func @transform_7(%arg0: i32, %arg1: i32) -> (i32, i32) {
    %c0_i32 = arith.constant 0 : i32
    %c0_i32_0 = arith.constant 0 : i32
    %c0_i32_1 = arith.constant 0 : i32
    return %c0_i32, %c0_i32_0 : i32, i32
  }
  func.func @transform_8(%arg0: i32, %arg1: i32) -> (i32, i32) {
    %c0_i32 = arith.constant 0 : i32
    %c0_i32_0 = arith.constant 0 : i32
    %c0_i32_1 = arith.constant 0 : i32
    return %c0_i32, %c0_i32_0 : i32, i32
  }
  func.func @transform_9(%arg0: i32, %arg1: i32) -> (i32, i32) {
    %c0_i32 = arith.constant 0 : i32
    %c0_i32_0 = arith.constant 0 : i32
    %c0_i32_1 = arith.constant 0 : i32
    return %c0_i32, %c0_i32_0 : i32, i32
  }
  func.func @transform_10(%arg0: i32, %arg1: i32) -> (i32, i32, i32) {
    %c0_i32 = arith.constant 0 : i32
    %c0_i32_0 = arith.constant 0 : i32
    return %arg0, %arg1, %c0_i32 : i32, i32, i32
  }
}

</mosaic_0001>

<bundles_post_ra>
// kernel: tpu_custom_call.1
= control target key start
LH: loop header
LB: loop body
LE: loop exit
PB: predicated region body
PF: predicated region fallthrough
CT: control target
= control target key end

     0   :  { %s2777_s0 = inlined_call_operand.hbm [shape: bf16[2,8,32], index: 0, kind: input, shape index: {}]   ;;  %s2778_s1 = inlined_call_operand.hbm [shape: bf16[2,8,32], index: 1, kind: input, shape index: {}]   ;;  %s2779_s2 = inlined_call_operand.hbm [shape: bf16[2,8,32], index: 2, kind: input, shape index: {}]   ;;  %s2780_s3 = inlined_call_operand.hbm [shape: s8[2,8,8], index: 3, kind: input, shape index: {}]   ;;  %s2781_s4 = inlined_call_operand.hbm [shape: bf16[32,32], index: 4, kind: input, shape index: {}]   ;;  %s2782_s5 = inlined_call_operand.vmem [shape: bf16[32,32], index: 5, kind: input, shape index: {}]   ;;  %s2783_s6 = inlined_call_operand.hbm [shape: bf16[32,32], index: 6, kind: input, shape index: {}]   ;;  %s2784_s7 = inlined_call_operand.hbm [shape: bf16[32,32], index: 7, kind: input, shape index: {}]   ;;  %s2785_s8 = inlined_call_operand.vmem [shape: f32[1,32], index: 8, kind: input, shape index: {}]   ;;  %s2786_s9 = inlined_call_operand.vmem [shape: f32[1,32], index: 9, kind: input, shape index: {}]   ;;  %s2787_s10 = inlined_call_operand.hbm [shape: f32[2,8,32], index: 10, kind: output, shape index: {}]  }
   0x1   :  { %2810 = sst [smem:[#allocation25_spill]] %s2777_s0 }
   0x2   :  { %2811 = sst [smem:[#allocation26_spill]] %s2778_s1 }
   0x3   :  { %2812 = sst [smem:[#allocation27_spill]] %s2780_s3 }
   0x4   :  { %2813 = sst [smem:[#allocation28_spill]] %s2782_s5 }
   0x5   :  { %2814 = sst [smem:[#allocation29_spill]] %s2785_s8 }
   0x6   :  { %2815 = sst [smem:[#allocation30_spill]] %s2786_s9 }
   0x7   :  { %2816 = sst [smem:[#allocation31_spill]] %s2787_s10 }
   0x8   :  { %15 = vsyncpa [#allocation3], 0 }
   0x9   :  { %17 = vsyncpa [#allocation3 + $0x1], 0 }
   0xa   :  { %18 = vsyncpa [#allocation6], 0 }
   0xb   :  { %19 = vsyncpa [#allocation9], 0 }
   0xc   :  { %21 = vsyncpa [#allocation9 + $0x1], 0 }
   0xd   :  { %22 = vsyncpa [#allocation12], 0 }
   0xe   :  { %23 = vsyncpa [#allocation4], 0 }
   0xf   :  { %25 = vsyncpa [#allocation4 + $0x1], 0  ;;  %s2254_s13 = smov 0   ;;  %s2256_s14 = smov 0  }
  0x10   :  { %s2258_s15 = smov 0   ;;  %s2260_s16 = smov 0  }
  0x11   :  { %s2262_s17 = smov 0   ;;  %s2264_s18 = smov 0  }
  0x12 LB: > { %2817 = sst [smem:[#allocation21_spill]] %s2162_s13  ;;  %s2285_s19 = sadd.s32 4294967295, %s2182_s18   ;;  %s2182_s18 = sphi %s2264_s18, %s31_s18   ;;  %s2178_s17 = sphi %s2262_s17, %s2862_s17   ;;  %s2174_s16 = sphi %s2260_s16, %s2861_s16   ;;  %s2170_s15 = sphi %s2258_s15, %s2860_s15   ;;  %s2166_s14 = sphi %s2256_s14, %s2859_s14   ;;  %s2162_s13 = sphi %s2254_s13, %s2858_s13  }
  0x13   : > { %s1549_s20 = sadd.s32 4294967294, %s2182_s18   ;;  %p65_p0 = scmp.ne.s32.totalorder %s2166_s14, %s2162_s13 }
  0x14   : > { %p2790_p1 = scmp.eq.s32.totalorder %s2285_s19, 0  ;;  %p303_p3 = scmp.eq.s32.totalorder %s1549_s20, 1 }
  0x15   : > { %p1550_p5 = scmp.ge.s32.totalorder %s2182_s18, 1  ;;  %p310_p7 = scmp.lt.s32.totalorder %s2182_s18, 3 }
  0x16   : > { %p2294_p4 = por %p2790_p1, %p65_p0  ;;  %p2299_p6 = por %p303_p3, %p65_p0 }
  0x17   : > { %s2788_s23 = sshll.u32 %s2174_s16, 6  ;;  %p2305_p8 = pnand %p1550_p5, %p310_p7 }
  0x18   : > { %s2818_s21 = scalar_select %p2294_p4, 1, 0 }
  0x19   : > { %s2820_s22 = scalar_select %p2299_p6, 1, 0 }
  0x1a   : > { %2819 = sst [smem:[#allocation22_spill]] %s2818_s21  ;;  %s2824_s1 = sld [smem:[#allocation26_spill]] }
  0x1b   : > { %2821 = sst [smem:[#allocation23_spill]] %s2820_s22  ;;  %s2184_s28 = smov [#allocation5]  }
  0x1c   : > { %s2822_s24 = scalar_select %p2305_p8, 1, 0 }
  0x1d   : > { %s325_s29 = sshll.u32 %s2184_s28, 4  ;;  %p1759_p9 = pneg %p2305_p8  ;;  %s2318_s29 = int_to_ptr.vmem [resolvable:$true] %s325_s29 }
  0x1e   : > { %2823 = sst [smem:[#allocation24_spill]] %s2822_s24  ;;  %s2185_s11 = smov [#allocation10]  }
  0x1f   : > { %p2323_p11 = pnand %p1759_p9, %p2294_p4  ;;  %s348_s12 = sshll.u32 %s2185_s11, 4  ;;  %s2327_s12 = int_to_ptr.vmem [resolvable:$true] %s348_s12 }
  0x20   : > { %s2314_s27 = scalar_lea.hbm %s2824_s1, %s2788_s23  ;;  %p2331_p12 = pnand %p1759_p9, %p2790_p1 }
  0x21   : > { %s2825_s30 = scalar_select %p2323_p11, 1, 0 }
  0x22   : > { %s2826_s20 = scalar_select %p2331_p12, 1, 0 }
  0x23   : > { %s1880_s25 = scalar_lea.hbm %s2314_s27, 64  ;;  %p2803_p0 = pneg %p2323_p11 }
  0x24   : > { %p1881_p13 = scmp.ne.s32.totalorder %s2314_s27, %s1880_s25  ;;  %s1885_s23 = scalar_lea.hbm %s2824_s1, 128 }
  0x25   : > { %p1886_p7 = scmp.lt.u32.totalorder %s2314_s27, %s2824_s1  ;;  %p1887_p9 = scmp.lt.u32.totalorder %s1885_s23, %s1880_s25 }
  0x26   : > { %p1883_p3 = pnand %p2803_p0, %p1881_p13  ;;  %p1889_p1 = scmp.lt.u32.totalorder %s1880_s25, %s2314_s27 }
  0x27   : > { %p1888_p10 = por %p1887_p9, %p1886_p7 }
  0x28   : > { %p1884_p5 = pneg %p1883_p3 }
  0x29   : > { %p1890_p2 = por %p1889_p1, %p1888_p10 }
  0x2b   : > { %p1891_p6 = pnand %p1890_p2, %p1884_p5 }
  0x2d   : > { %1894 = shalt.err (!%p1891_p6)
}
  0x2e   : > { %s1895_s13 = scalar_lea.vmem %s2318_s29, 64  ;;  %p1903_p8 = scmp.lt.s32.totalorder %s2318_s29, %s2318_s29 }
  0x2f   : > { %p1896_p13 = scmp.ne.s32.totalorder %s2318_s29, %s1895_s13  ;;  %p1904_p12 = scmp.lt.s32.totalorder %s1895_s13, %s1895_s13 }
  0x31   : > { %p1898_p3 = pnand %p1896_p13, %p2803_p0  ;;  %p1905_p7 = por %p1904_p12, %p1903_p8 }
  0x33   : > { %p1899_p4 = pneg %p1898_p3 }
  0x35   : > { %p1906_p9 = pnand %p1905_p7, %p1899_p4 }
  0x37   : > { %1909 = shalt.err (!%p1906_p9)
}
  0x38   : > { %1762 = dma.hbm_to_vmem [thread:$0]  (!%p2323_p11), %s2314_s27, 64, %s2318_s29, [#allocation6]  }
  0x39   : > { %s1910_s25 = scalar_lea.hbm %s2781_s4, 256  ;;  %p2827_p2 = scmp.ne.s32.totalorder %s2826_s20, 0 }
  0x3a   : > { %p1911_p1 = scmp.ne.s32.totalorder %s2781_s4, %s1910_s25  ;;  %p1917_p10 = scmp.lt.u32.totalorder %s1910_s25, %s2781_s4 }
  0x3b   : > { %p2369_p6 = pneg %p2827_p2 }
  0x3d   : > { %s2828_s13 = scalar_select %p2369_p6, 1, 0 }
  0x3e   : > { %p1913_p4 = pnand %p2369_p6, %p1911_p1 }
  0x40   : > { %p1914_p8 = pneg %p1913_p4 }
  0x42   : > { %p1919_p12 = pnand %p1917_p10, %p1914_p8 }
  0x44   : > { %1922 = shalt.err (!%p1919_p12)
}
  0x45   : > { %s1923_s27 = scalar_lea.vmem %s2327_s12, 256  ;;  %p1931_p7 = scmp.lt.s32.totalorder %s2327_s12, %s2327_s12 }
  0x46   : > { %p1924_p5 = scmp.ne.s32.totalorder %s2327_s12, %s1923_s27  ;;  %p1932_p9 = scmp.lt.s32.totalorder %s1923_s27, %s1923_s27 }
  0x48   : > { %p1926_p13 = pnand %p1924_p5, %p2369_p6  ;;  %p1933_p1 = por %p1932_p9, %p1931_p7 }
  0x4a   : > { %p1927_p3 = pneg %p1926_p13 }
  0x4c   : > { %p1934_p4 = pnand %p1933_p1, %p1927_p3 }
  0x4e   : > { %1937 = shalt.err (!%p1934_p4)
}
  0x4f   : > { %s2186_s29 = smov 64   ;;  %s2187_s1 = smov 4  }
  0x50   : > { %1768 = dma.hbm_to_vmem [thread:$0]  (!%p2827_p2), %s2781_s4, 256, %s2327_s12, [#allocation9], %s2186_s29, %s2186_s29, %s2187_s1  }
  0x51   : > { %s2829_s25 = sshll.u32 %s2174_s16, 6  ;;  %s2188_s27 = smov [#allocation11]  }
  0x52   : > { %s2398_s11 = scalar_lea.hbm %s2779_s2, %s2829_s25  ;;  %s364_s10 = sshll.u32 %s2188_s27, 4  ;;  %s365_s10 = int_to_ptr.vmem [resolvable:$true] %s364_s10 }
  0x53   : > { %s2189_s9 = smov [#allocation7]   ;;  %s1938_s24 = scalar_lea.hbm %s2783_s6, 256 }
  0x54   : > { %s338_s8 = sshll.u32 %s2189_s9, 4  ;;  %p1939_p8 = scmp.ne.s32.totalorder %s2783_s6, %s1938_s24  ;;  %s339_s8 = int_to_ptr.vmem [resolvable:$true] %s338_s8 }
  0x55   : > { %p1945_p5 = scmp.lt.u32.totalorder %s1938_s24, %s2783_s6 }
  0x56   : > { %p1941_p10 = pnand %p1939_p8, %p2369_p6 }
  0x58   : > { %p1942_p12 = pneg %p1941_p10 }
  0x5a   : > { %p1947_p13 = pnand %p1945_p5, %p1942_p12 }
  0x5c   : > { %1950 = shalt.err (!%p1947_p13)
}
  0x5d   : > { %s1951_s23 = scalar_lea.vmem %s365_s10, 256  ;;  %p1959_p1 = scmp.lt.s32.totalorder %s365_s10, %s365_s10 }
  0x5e   : > { %p1952_p3 = scmp.ne.s32.totalorder %s365_s10, %s1951_s23  ;;  %p1960_p4 = scmp.lt.s32.totalorder %s1951_s23, %s1951_s23 }
  0x60   : > { %p1954_p7 = pnand %p1952_p3, %p2369_p6  ;;  %p1961_p0 = por %p1960_p4, %p1959_p1 }
  0x62   : > { %p1955_p9 = pneg %p1954_p7 }
  0x64   : > { %p1962_p11 = pnand %p1961_p0, %p1955_p9 }
  0x66   : > { %1965 = shalt.err (!%p1962_p11)
}
  0x67   : > { %1771 = dma.hbm_to_vmem [thread:$0]  (!%p2827_p2), %s2783_s6, 256, %s365_s10, [#allocation12], %s2186_s29, %s2186_s29, %s2187_s1  }
  0x68   : > { %s1966_s5 = scalar_lea.hbm %s2398_s11, 64  ;;  %p2830_p10 = scmp.ne.s32.totalorder %s2825_s30, 0 }
  0x69   : > { %p1967_p8 = scmp.ne.s32.totalorder %s2398_s11, %s1966_s5  ;;  %s1971_s24 = scalar_lea.hbm %s2779_s2, 128 }
  0x6a   : > { %p2831_p0 = pneg %p2830_p10  ;;  %p1972_p5 = scmp.lt.u32.totalorder %s2398_s11, %s2779_s2 }
  0x6b   : > { %p1973_p13 = scmp.lt.u32.totalorder %s1971_s24, %s1966_s5  ;;  %p1975_p7 = scmp.lt.u32.totalorder %s1966_s5, %s2398_s11 }
  0x6c   : > { %p1969_p11 = pnand %p1967_p8, %p2831_p0 }
  0x6d   : > { %p1974_p3 = por %p1973_p13, %p1972_p5 }
  0x6e   : > { %p1970_p12 = pneg %p1969_p11 }
  0x6f   : > { %p1976_p9 = por %p1975_p7, %p1974_p3 }
  0x71   : > { %p1977_p1 = pnand %p1976_p9, %p1970_p12 }
  0x73   : > { %1980 = shalt.err (!%p1977_p1)
}
  0x74   : > { %s1981_s10 = scalar_lea.vmem %s339_s8, 64  ;;  %p2832_p8 = pmov %p2831_p0 }
  0x75   : > { %p1982_p4 = scmp.ne.s32.totalorder %s339_s8, %s1981_s10  ;;  %p1989_p2 = scmp.lt.s32.totalorder %s339_s8, %s339_s8 }
  0x76   : > { %p1990_p6 = scmp.lt.s32.totalorder %s1981_s10, %s1981_s10 }
  0x77   : > { %p1984_p0 = pnand %p1982_p4, %p2832_p8 }
  0x78   : > { %p1991_p5 = por %p1990_p6, %p1989_p2 }
  0x79   : > { %p1985_p11 = pneg %p1984_p0 }
  0x7b   : > { %p1992_p13 = pnand %p1991_p5, %p1985_p11 }
  0x7d   : > { %1995 = shalt.err (!%p1992_p13)
}
  0x7e   : > { %1765 = dma.hbm_to_vmem [thread:$0]  (!%p2830_p10), %s2398_s11, 64, %s339_s8, [#allocation6]  }
  0x7f   : > { %s2190_s28 = smov [#allocation13]   ;;  %s1996_s23 = scalar_lea.hbm %s2784_s7, 256 }
  0x80   : > { %s377_s27 = sshll.u32 %s2190_s28, 4  ;;  %p1997_p12 = scmp.ne.s32.totalorder %s2784_s7, %s1996_s23  ;;  %s378_s27 = int_to_ptr.vmem [resolvable:$true] %s377_s27 }
  0x81   : > { %p2833_p3 = scmp.ne.s32.totalorder %s2828_s13, 0  ;;  %p2003_p7 = scmp.lt.u32.totalorder %s1996_s23, %s2784_s7 }
  0x83   : > { %p1999_p2 = pnand %p1997_p12, %p2833_p3 }
  0x85   : > { %p2000_p6 = pneg %p1999_p2 }
  0x87   : > { %p2005_p9 = pnand %p2003_p7, %p2000_p6 }
  0x89   : > { %2008 = shalt.err (!%p2005_p9)
}
  0x8a   : > { %s2009_s8 = scalar_lea.vmem %s378_s27, 256  ;;  %p2017_p8 = scmp.lt.s32.totalorder %s378_s27, %s378_s27 }
  0x8b   : > { %p2010_p10 = scmp.ne.s32.totalorder %s378_s27, %s2009_s8  ;;  %p2018_p0 = scmp.lt.s32.totalorder %s2009_s8, %s2009_s8 }
  0x8d   : > { %p2012_p1 = pnand %p2010_p10, %p2833_p3  ;;  %p2019_p11 = por %p2018_p0, %p2017_p8 }
  0x8f   : > { %p2013_p4 = pneg %p2012_p1 }
  0x91   : > { %p2020_p5 = pnand %p2019_p11, %p2013_p4 }
  0x93   : > { %2023 = shalt.err (!%p2020_p5)
}
  0x94   : > { %p2834_p13 = scmp.ne.s32.totalorder %s2826_s20, 0  ;;  %s43_s13 = sadd.s32 1, %s2178_s17 }
  0x95   : > { %s52_s20 = sadd.s32 1, %s2170_s15  ;;  %p45_p12 = scmp.ge.s32.totalorder %s43_s13, 2 }
  0x96   : > { %1774 = dma.hbm_to_vmem [thread:$0]  (!%p2834_p13), %s2784_s7, 256, %s378_s27, [#allocation12], %s2186_s29, %s2186_s29, %s2187_s1  }
  0x97   : > { %p59_p3 = scmp.ne.s32.totalorder %s2170_s15, %s2166_s14  ;;  %p60_p2 = scmp.eq.s32.totalorder %s2182_s18, 0 }
  0x98   : > { %p1789_p6 = scmp.lt.s32.totalorder %s2182_s18, 2  ;;  %s2864_s13 = smov (%p45_p12, %s43_s13), 0 }
  0x99   : > { %p61_p7 = por %p60_p2, %p59_p3  ;;  %p2835_p9 = scmp.eq.s32.totalorder %s2285_s19, 1 }
  0x9a   : > { %s47_s24 = ssub.s32 %s2178_s17, %s2864_s13  ;;  %s2478_s25 = sand.u32 1, %s2170_s15  }
  0x9b   : > { %p2471_p10 = por %p2835_p9, %p59_p3  ;;  %p50_p1 = scmp.eq.s32.totalorder %s47_s24, 0 }
  0x9c   : > { %s1557_s29 = sshll.u32 %s2478_s25, 2  ;;  %s1558_s1 = sshll.u32 %s2178_s17, 6 }
  0x9d   : > { %s2836_s21 = scalar_select %p2471_p10, 1, 0 }
  0x9e   : > { %s2483_s26 = scalar_select %p50_p1, %s2170_s15, %s52_s20  }
  0x9f   : > { %s2837_s27 = sld [smem:[#allocation25_spill]]  ;;  %s401_s22 = scalar_lea.vmem [#allocation2], %s1557_s29 }
  0xa0   : > { %s409_s23 = sshll.u32 %s401_s22, 4  ;;  %p2492_p4 = pnand %p1789_p6, %p61_p7  ;;  %s2496_s23 = int_to_ptr.vmem [resolvable:$true] %s409_s23 }
  0xa1   : > { %s416_s3 = sand.u32 1, %s2182_s18   ;;  %s398_s5 = scalar_lea.sflag [#allocation3], %s2478_s25 }
  0xa2   : > { %p2026_p0 = pneg %p2492_p4 }
  0xa5   : > { %s2488_s12 = scalar_lea.hbm %s2837_s27, %s1558_s1  ;;  %s2029_s11 = scalar_lea.hbm %s2837_s27, 128 }
  0xa6   : > { %s2024_s9 = scalar_lea.hbm %s2488_s12, 64  ;;  %p2030_p13 = scmp.lt.u32.totalorder %s2488_s12, %s2837_s27 }
  0xa7   : > { %p2025_p8 = scmp.ne.s32.totalorder %s2488_s12, %s2024_s9  ;;  %p2031_p12 = scmp.lt.u32.totalorder %s2029_s11, %s2024_s9 }
  0xa8   : > { %p2033_p2 = scmp.lt.u32.totalorder %s2024_s9, %s2488_s12 }
  0xa9   : > { %p2027_p11 = pnand %p2026_p0, %p2025_p8  ;;  %p2032_p3 = por %p2031_p12, %p2030_p13 }
  0xab   : > { %p2028_p5 = pneg %p2027_p11  ;;  %p2034_p6 = por %p2033_p2, %p2032_p3 }
  0xad   : > { %p2035_p7 = pnand %p2034_p6, %p2028_p5 }
  0xaf   : > { %2038 = shalt.err (!%p2035_p7)
}
  0xb0   : > { %s2039_s29 = scalar_lea.vmem %s2496_s23, 64  ;;  %s2191_s1 = smov [#allocation2]  }
  0xb1   : > { %p2040_p9 = scmp.ne.s32.totalorder %s2496_s23, %s2039_s29  ;;  %s2044_s10 = sshll.u32 %s2191_s1, 4  ;;  %s2045_s10 = int_to_ptr.vmem [resolvable:$false] %s2044_s10 }
  0xb2   : > { %s2046_s28 = scalar_lea.vmem %s2045_s10, 128  ;;  %p2047_p11 = scmp.lt.s32.totalorder %s2496_s23, %s2045_s10 }
  0xb3   : > { %p2042_p1 = pnand %p2040_p9, %p2026_p0  ;;  %p2048_p13 = scmp.lt.s32.totalorder %s2046_s28, %s2039_s29 }
  0xb5   : > { %p2043_p8 = pneg %p2042_p1  ;;  %p2049_p12 = por %p2048_p13, %p2047_p11 }
  0xb7   : > { %p2050_p3 = pnand %p2049_p12, %p2043_p8 }
  0xb9   : > { %2053 = shalt.err (!%p2050_p3)
}
  0xba   : > { %1778 = dma.hbm_to_vmem [thread:$0]  (!%p2492_p4), %s2488_s12, 64, %s2496_s23, %s398_s5  }
  0xbb   : > { %s1559_s22 = sshll.u32 %s2478_s25, 1  ;;  %s1560_s9 = sshll.u32 %s2178_s17, 5 }
  0xbc   : > { %s2839_s11 = sld [smem:[#allocation27_spill]]  ;;  %s420_s24 = scalar_lea.vmem [#allocation8], %s1559_s22 }
  0xbd   : > { %s428_s29 = sshll.u32 %s420_s24, 4  ;;  %s417_s1 = scalar_lea.sflag [#allocation9], %s416_s3  ;;  %s429_s29 = int_to_ptr.vmem [resolvable:$true] %s428_s29 }
  0xc2   : > { %s2530_s20 = scalar_lea.hbm %s2839_s11, %s1560_s9  ;;  %s2059_s23 = scalar_lea.hbm %s2839_s11, 64 }
  0xc3   : > { %s2054_s10 = scalar_lea.hbm %s2530_s20, 32  ;;  %p2060_p7 = scmp.lt.u32.totalorder %s2530_s20, %s2839_s11 }
  0xc4   : > { %p2055_p5 = scmp.ne.s32.totalorder %s2530_s20, %s2054_s10  ;;  %p2061_p9 = scmp.lt.u32.totalorder %s2059_s23, %s2054_s10 }
  0xc5   : > { %p2063_p8 = scmp.lt.u32.totalorder %s2054_s10, %s2530_s20 }
  0xc6   : > { %p2057_p2 = pnand %p2055_p5, %p2026_p0  ;;  %p2062_p1 = por %p2061_p9, %p2060_p7 }
  0xc8   : > { %p2058_p6 = pneg %p2057_p2  ;;  %p2064_p11 = por %p2063_p8, %p2062_p1 }
  0xca   : > { %p2065_p13 = pnand %p2064_p11, %p2058_p6 }
  0xcc   : > { %2068 = shalt.err (!%p2065_p13)
}
  0xcd   : > { %s2069_s3 = scalar_lea.vmem %s429_s29, 32  ;;  %s2192_s22 = smov [#allocation8]  }
  0xce   : > { %p2070_p12 = scmp.ne.s32.totalorder %s429_s29, %s2069_s3  ;;  %s2074_s9 = sshll.u32 %s2192_s22, 4  ;;  %s2075_s9 = int_to_ptr.vmem [resolvable:$false] %s2074_s9 }
  0xcf   : > { %s2076_s8 = scalar_lea.vmem %s2075_s9, 64  ;;  %p2077_p2 = scmp.lt.s32.totalorder %s429_s29, %s2075_s9 }
  0xd0   : > { %p2072_p3 = pnand %p2070_p12, %p2026_p0  ;;  %p2078_p10 = scmp.lt.s32.totalorder %s2076_s8, %s2069_s3 }
  0xd2   : > { %p2073_p5 = pneg %p2072_p3  ;;  %p2079_p7 = por %p2078_p10, %p2077_p2 }
  0xd4   : > { %p2080_p9 = pnand %p2079_p7, %p2073_p5 }
  0xd6   : > { %2083 = shalt.err (!%p2080_p9)
}
  0xd7   : > { %1781 = dma.hbm_to_vmem [thread:$0]  (!%p2492_p4), %s2530_s20, 32, %s429_s29, %s417_s1  }
  0xd8   : > { %s2840_s30 = sld [smem:[#allocation24_spill]] }
  0xde   : > { %p2841_p6 = scmp.ne.s32.totalorder %s2840_s30, 0 }
  0xdf   : > { %s2842_s24 = sld [smem:[#allocation22_spill]] (!%p2841_p6)  ;;  %s2556_s10 = sand.u32 (!%p2841_p6), 1, %s2166_s14  }
  0xe0   : > { %437 = sbr.rel (%p2841_p6) target bundleno = 2864 (0xb30), region = 60  ;;  %s1562_s25 = sshll.u32 (!%p2841_p6), %s2556_s10, 2 }
  0xe1   : > { %s440_s12 = scalar_lea.sflag (!%p2841_p6), [#allocation3], %s2556_s10  ;;  %s2560_s23 = scalar_lea.vmem (!%p2841_p6), [#allocation2], %s1562_s25 }
  0xe5   : > { %p2843_p10 = scmp.ne.s32.totalorder (!%p2841_p6), %s2842_s24, 0 }
  0xe7   : > { %2137 = dma.done.wait (%p2843_p10), %s440_s12, 64  }
  0xe8   : > { %2139 = vsyncadd (%p2843_p10), %s440_s12, 4294967232 }
  0xe9   : > { %2141 = dma.done.wait (%p2843_p10), [#allocation6], 128  }
  0xea   : > { %2143 = vsyncadd (%p2843_p10), [#allocation6], 4294967168  ;;  %s456_s0 = sand.u32 1, %s2285_s19   ;;  %s1563_s20 = sshll.u32 %s2556_s10, 1 }
  0xeb   : > { %s457_s29 = scalar_lea.sflag [#allocation9], %s456_s0  ;;  %s2572_s1 = scalar_lea.vmem [#allocation8], %s1563_s20 }
  0xec   : > { %2145 = dma.done.wait (%p2843_p10), %s457_s29, 32  }
  0xed   : > { %2147 = vsyncadd (%p2843_p10), %s457_s29, 4294967264  ;;  %p2844_p4 = scmp.eq.s32.totalorder %s2285_s19, 0 }
  0xef   : > { %2149 = dma.done.wait (%p2844_p4), [#allocation9], 256   ;;  %p2845_p0 = pmov %p2844_p4 }
  0xf1   : > { %2151 = vsyncadd (%p2845_p0), [#allocation9], 4294967040  ;;  %p2846_p1 = pmov %p2845_p0 }
  0xf2   : > { %p2847_p8 = pmov %p2845_p0 }
  0xf3   : > { %2153 = dma.done.wait (%p2846_p1), [#allocation12], 512  }
  0xf4   : > { %2155 = vsyncadd (%p2847_p8), [#allocation12], 4294966784  ;;  %v2193_v0 = vmov 0.0   ;;  %vm2194_vm0 = vmmov 0   ;;  %s2848_s3 = sld [smem:[#allocation28_spill]]  ;;  %v1856_v3 = vld [vmem:[#allocation10] sm:$0xff]  }
  0xf5   : > { %1636 = vmatprep.subr.bf16.mxu1 %v2193_v0  ;;  %1628 = vmatprep.subr.bf16.mxu0 %v2193_v0  ;;  %v1857_v4 = vld [vmem:[#allocation10 + $0x8] sm:$0xff]   ;;  %v516_v5 = vld [vmem:[#allocation5] sm:$0xf]  ;;  %vm538_vm1 = vcmask 261120   ;;  %vm704_vm2 = vcmask 64512   ;;  %s2195_s9 = smov 120  }
  0xf6   : > { %1640 = vmatprep.mubr.msk.bf16.mxu1 %vm2194_vm0, %v2193_v0  ;;  %1632 = vmatprep.mubr.msk.bf16.mxu0 %vm2194_vm0, %v2193_v0  ;;  %v2602_v6 = vld [vmem:[%s2560_s23] sm:$0xf]  ;;  %s2196_s8 = smov 112   ;;  %v1859_v19 = vld [vmem:[#allocation11 + $0x8] sm:$0xff]   ;;  %vm766_vm3 = vcmask 1043456   ;;  %s2197_s30 = smov 104  }
  0xf7   : > { %1629 = vmatpush3.bf16.msra.mxu0 %v1856_v3  ;;  %v1858_v18 = vld [vmem:[#allocation11] sm:$0xff]   ;;  %v517_v20 = vld [vmem:[#allocation7] sm:$0xf]  ;;  %v518_v21 = vld [vmem:[%s2572_s1] sm:$0x3]  ;;  %s1567_s24 = sshll.u32 %s2556_s10, 3 }
  0xf8   : > { %1630 = vmatprep.subr.bf16.mxu0 %v2193_v0  ;;  %v519_v22 = vunpack.c.0.s8 %v518_v21  ;;  %v811_v52 = vld [vmem:[#allocation13] sm:$0xf]  ;;  %s2849_s23 = sld [smem:[#allocation29_spill]]  ;;  %s2850_s29 = sld [smem:[#allocation30_spill]] }
  0xf9   : > { %v816_v53 = vsel %vm766_vm3, %v811_v52, 0  ;;  %s1592_s1 = sshll.u32 %s2174_s16, 7  ;;  %s513_s5 = scalar_lea.vmem [#allocation14], %s1567_s24 }
  0xfa   : > { %v1854_v1 = vld [vmem:[%s2848_s3] sm:$0xff]   ;;  %v1855_v2 = vld [vmem:[%s2848_s3 + $0x8] sm:$0xff]   ;;  %v520_v23 = vcvt.s32.f32 %v519_v22  ;;  %s1393_s28 = sshll.u32 %s513_s5, 4  ;;  %p2852_p13 = scmp.ne.s32.totalorder %s2836_s21, 0  ;;  %s2729_s28 = int_to_ptr.vmem [resolvable:$true] %s1393_s28 }
  0xfb   : > { %1637 = vmatpush3.bf16.msra.mxu1 %v1854_v1  ;;  %1631 = vmatpush3.bf16.msra.mxu0 %v1857_v4  ;;  %s2084_s25 = scalar_lea.vmem %s2729_s28, 128  ;;  %s2198_s16 = smov [#allocation14]  }
  0xfc   : > { %1638 = vmatprep.subr.bf16.mxu1 %v2193_v0  ;;  %1644 = vmatprep.subr.bf16.mxu0 %v2193_v0  ;;  %v2635_v24 = vmul.f32 -1e+30, %v520_v23  ;;  %p2085_p11 = scmp.ne.s32.totalorder %s2729_s28, %s2084_s25  ;;  %s2088_s24 = sshll.u32 %s2198_s16, 4  ;;  %s2089_s24 = int_to_ptr.vmem [resolvable:$false] %s2088_s24 }
  0xfd   : > { %s2090_s12 = scalar_lea.vmem %s2089_s24, 256  ;;  %p2091_p5 = scmp.lt.s32.totalorder %s2729_s28, %s2089_s24 }
  0xfe   : > { %1633 = vmatmul.mubr.msk.bf16.vlgmr.msra.gmra.mrb[0].mxu0 %vm538_vm1, %v2602_v6  ;;  %p2086_p12 = pnand %p2085_p11, %p2852_p13  ;;  %p2092_p2 = scmp.lt.s32.totalorder %s2090_s12, %s2084_s25 }
  0xff   : > { %1639 = vmatpush3.bf16.msra.mxu1 %v1855_v2  ;;  %1648 = vmatprep.mubr.msk.bf16.mxu0 %vm2194_vm0, %v2193_v0 }
 0x100   : > { %1652 = vmatprep.subr.bf16.mxu1 %v2193_v0  ;;  %1645 = vmatpush3.bf16.msra.mxu0 %v1858_v18  ;;  %p2087_p3 = pneg %p2086_p12  ;;  %p2093_p7 = por %p2092_p2, %p2091_p5 }
 0x101   : > { %1646 = vmatprep.subr.bf16.mxu0 %v2193_v0 }
 0x102   : > { %1641 = vmatmul.mubr.msk.bf16.vlgmr.msra.gmra.mrb[0].mxu1 %vm538_vm1, %v516_v5  ;;  %p2094_p9 = pnand %p2093_p7, %p2087_p3 }
 0x103   : > { %1654 = vmatprep.mubr.msk.bf16.mxu1 %vm2194_vm0, %v2193_v0 }
 0x104   : > { %1647 = vmatpush3.bf16.msra.mxu0 %v1859_v19 }
 0x105   : > { %1658 = vmatprep.subr.bf16.mxu0 %v2193_v0 }
 0x107   : > { %1649 = vmatmul.mubr.msk.bf16.vlgmr.msra.gmra.mrb[4].mxu0 %vm538_vm1, %v517_v20 }
 0x108   : > { %1660 = vmatprep.mubr.msk.bf16.mxu0 %vm2194_vm0, %v2193_v0 }
 0x1d1   : > { %v576_v11 = vpop.f32.mrb[0].mxu0 }
 0x1d2   : > { %v2618_v14 = vpack.c.bf16 %v576_v11, %v576_v11  ;;  %v1634_v15 = vpop.f32.mrb[1].mxu0 }
 0x1d3   : > { %v579_v16 = vpop.f32.mrb[2].mxu0 }
 0x1d4   : > { %v1635_v17 = vpop.f32.mrb[3].mxu0 }
 0x1d5   : > { %v636_v7 = vpop.f32.mrb[0].mxu1 }
 0x1d6   : > { %v2612_v8 = vpack.c.bf16 %v636_v7, %v636_v7  ;;  %v1642_v9 = vpop.f32.mrb[1].mxu1 }
 0x1d7   : > { %v639_v10 = vpop.f32.mrb[2].mxu1 }
 0x1d8   : > { %863 = vrot.lane.b32.xlu1 %v2612_v8, %s2195_s9  ;;  %v1643_v12 = vpop.f32.mrb[3].mxu1  ;;  %v709_v13 = vsel %vm704_vm2, %v2612_v8, 0 }
 0x1d9   : > { %1653 = vmatpush3.bf16.xpose.msra.mxu1 %v709_v13 }
 0x1da   : > { %1664 = vmatprep.subr.bf16.mxu1 %v2193_v0  ;;  %v696_v36 = vpop.f32.mrb[4].mxu0 }
 0x1db   : > { %v1650_v37 = vpop.f32.mrb[5].mxu0  ;;  %v2640_v39 = vpack.c.bf16 %v696_v36, %v696_v36 }
 0x1dc   : > { %860 = vrot.lane.b32.xlu1 %v2618_v14, %s2195_s9  ;;  %v699_v38 = vpop.f32.mrb[6].mxu0 }
 0x1dd   : > { %v1651_v40 = vpop.f32.mrb[7].mxu0  ;;  %v768_v41 = vsel %vm766_vm3, %v2640_v39, 0 }
 0x1de   : > { %1659 = vmatpush3.bf16.msra.mxu0 %v768_v41 }
 0x1df   : > { %1670 = vmatprep.subr.bf16.mxu0 %v2193_v0 }
 0x1e0   : > { %1655 = vmatmul.mubr.msk.bf16.vlgmr.msra.gmra.mrb[4].mxu1 %vm704_vm2, %v2618_v14  ;;  %1021 = vrot.lane.b32.xlu1 %v2618_v14, %s2196_s8 }
 0x1e1   : > { %1666 = vmatprep.mubr.msk.bf16.mxu1 %vm2194_vm0, %v2193_v0  ;;  %1665 = vmatpush3.bf16.msra.mxu1 %v816_v53 }
 0x1e2   : > { %1676 = vmatprep.subr.bf16.mxu1 %v2193_v0 }
 0x24a   : > { %v864_v45 = vpop.permute.xlu1 %863 }
 0x24b   : > { %v869_v47 = vsel %vm704_vm2, %v864_v45, 0 }
 0x24e   : > { %v861_v49 = vpop.permute.xlu1 %860 }
 0x252   : > { %v1022_v51 = vpop.permute.xlu1 %1021 }
 0x2b3   : > { %v745_v25 = vpop.f32.mrb[4].mxu1 }
 0x2b4   : > { %v746_v26 = vadd.f32 %v745_v25, %v2635_v24  ;;  %v1656_v27 = vpop.f32.mrb[5].mxu1 }
 0x2b5   : > { %v748_v28 = vpop.f32.mrb[6].mxu1 }
 0x2b6   : > { %v1657_v29 = vpop.f32.mrb[7].mxu1  ;;  %v751_v30 = vsel %vm704_vm2, %v746_v26, -inf }
 0x2b7   : > { %752 = vmax.xlane.f32.xlu0 %v751_v30 }
 0x344   : > { %v753_v31 = vpop.xlane.xlu0 %752 }
 0x345   : > { %v754_v32 = vsub.f32 %v746_v26, %v753_v31 }
 0x347   : > { %v755_v33 = vmul.f32 1.442695, %v754_v32 }
 0x349   : > { %1860 = vpow2.f32 %v755_v33 }
 0x353   : > { %v1861_v34 = vpop.eup %1860 }
 0x354   : > { %v757_v35 = vsel %vm704_vm2, %v1861_v34, 0.0 }
 0x355   : > { %758 = vadd.xlane.f32.xlu0 %v757_v35  ;;  %v973_v35 = vld [vmem:[#allocation13 + $0x4] sm:$0xf] }
 0x356   : > { %v978_v36 = vsel %vm766_vm3, %v973_v35, 0 }
 0x36b   : > { %1023 = vrot.lane.b32.xlu0 %v2612_v8, %s2196_s8 }
 0x3e2   : > { %v759_v42 = vpop.xlane.xlu0 %758 }
 0x3e3   : > { %1862 = vrcp.f32 %v759_v42 }
 0x3e6   : > { %v1024_v48 = vpop.permute.xlu0 %1023 }
 0x3e7   : > { %v1029_v50 = vsel %vm704_vm2, %v1024_v48, 0  ;;  %v1132_v48 = vld [vmem:[#allocation13 + $0x8] sm:$0xf] }
 0x3e8   : > { %v1137_v52 = vsel %vm766_vm3, %v1132_v48, 0 }
 0x3ed   : > { %v1863_v43 = vpop.eup %1862 }
 0x3ee   : > { %v761_v44 = vmul.f32 %v1863_v43, %v1861_v34 }
 0x3f0   : > { %v762_v46 = vpack.c.bf16 %v761_v44, %v761_v44 }
 0x3f2   : > { %1661 = vmatmul.mubr.msk.bf16.vlgmr.msra.gmra.mrb[8].mxu0 %vm704_vm2, %v762_v46 }
 0x3f3   : > { %1671 = vmatpush3.bf16.xpose.msra.mxu0 %v869_v47  ;;  %1672 = vmatprep.mubr.msk.bf16.mxu0 %vm2194_vm0, %v2193_v0 }
 0x3f4   : > { %1688 = vmatprep.subr.bf16.mxu0 %v2193_v0 }
 0x3fa   : > { %1673 = vmatmul.mubr.msk.bf16.vlgmr.msra.gmra.mrb[12].mxu0 %vm704_vm2, %v861_v49 }
 0x3fb   : > { %1689 = vmatpush3.bf16.xpose.msra.mxu0 %v1029_v50  ;;  %1690 = vmatprep.mubr.msk.bf16.mxu0 %vm2194_vm0, %v2193_v0 }
 0x3fc   : > { %1694 = vmatprep.subr.bf16.mxu0 %v2193_v0 }
 0x402   : > { %1691 = vmatmul.mubr.msk.bf16.vlgmr.msra.gmra.mrb[16].mxu0 %vm704_vm2, %v1022_v51 }
 0x403   : > { %1696 = vmatprep.mubr.msk.bf16.mxu0 %vm2194_vm0, %v2193_v0 }
 0x4c5   : > { %v804_v54 = vpop.f32.mrb[8].mxu0 }
 0x4c6   : > { %v810_v55 = vpack.c.bf16 %v804_v54, %v804_v54  ;;  %v1662_v56 = vpop.f32.mrb[9].mxu0 }
 0x4c7   : > { %v807_v57 = vpop.f32.mrb[10].mxu0 }
 0x4c8   : > { %v1663_v58 = vpop.f32.mrb[11].mxu0  ;;  %1667 = vmatmul.mubr.msk.bf16.vlgmr.msra.gmra.mrb[8].mxu1 %vm704_vm2, %v810_v55 }
 0x4c9   : > { %1678 = vmatprep.mubr.msk.bf16.mxu1 %vm2194_vm0, %v2193_v0 }
 0x4cd   : > { %v905_v59 = vpop.f32.mrb[12].mxu0 }
 0x4ce   : > { %v1674_v60 = vpop.f32.mrb[13].mxu0  ;;  %v906_v7 = vadd.f32 %v905_v59, %v2635_v24 }
 0x4cf   : > { %v908_v61 = vpop.f32.mrb[14].mxu0 }
 0x4d0   : > { %v1675_v62 = vpop.f32.mrb[15].mxu0  ;;  %v911_v9 = vsel %vm704_vm2, %v906_v7, -inf }
 0x4d5   : > { %v1065_v63 = vpop.f32.mrb[16].mxu0 }
 0x4d6   : > { %v1066_v1 = vadd.f32 %v1065_v63, %v2635_v24  ;;  %v1692_v2 = vpop.f32.mrb[17].mxu0 }
 0x4d7   : > { %v1068_v3 = vpop.f32.mrb[18].mxu0 }
 0x4d8   : > { %v1693_v4 = vpop.f32.mrb[19].mxu0  ;;  %v1071_v5 = vsel %vm704_vm2, %v1066_v1, -inf }
 0x4d9   : > { %1072 = vmax.xlane.f32.xlu1 %v1071_v5 }
 0x4ea   : > { %1083 = vrot.lane.b32.xlu1 %v2640_v39, %s2196_s8 }
 0x4ee   : > { %1180 = vrot.lane.b32.xlu1 %v2618_v14, %s2197_s30 }
 0x512   : > { %912 = vmax.xlane.f32.xlu1 %v911_v9 }
 0x523   : > { %924 = vrot.lane.b32.xlu1 %v2640_v39, %s2195_s9  ;;  %s2851_s9 = sld [smem:[#allocation31_spill]] }
 0x529   : > { %s2727_s8 = scalar_lea.hbm %s2851_s9, %s1592_s1 }
 0x566   : > { %v1073_v10 = vpop.xlane.xlu1 %1072 }
 0x567   : > { %v1074_v11 = vsub.f32 %v1066_v1, %v1073_v10  ;;  %v1291_v1 = vld [vmem:[#allocation13 + $0xc] sm:$0xf] }
 0x568   : > { %v1296_v4 = vsel %vm766_vm3, %v1291_v1, 0 }
 0x569   : > { %v1075_v12 = vmul.f32 1.442695, %v1074_v11  ;;  %v703_v11 = vunpack.c.l.bf16 %v2602_v6 }
 0x56a   : > { %v1084_v13 = vpop.permute.xlu1 %1083 }
 0x56b   : > { %1864 = vpow2.f32 %v1075_v12  ;;  %v1089_v15 = vsel %vm766_vm3, %v1084_v13, 0 }
 0x56c   : > { %1695 = vmatpush3.bf16.msra.mxu0 %v1089_v15 }
 0x56d   : > { %1706 = vmatprep.subr.bf16.mxu0 %v2193_v0 }
 0x56e   : > { %v1181_v17 = vpop.permute.xlu1 %1180 }
 0x575   : > { %v1865_v16 = vpop.eup %1864 }
 0x576   : > { %v1077_v14 = vsel %vm704_vm2, %v1865_v16, 0.0 }
 0x577   : > { %1078 = vadd.xlane.f32.xlu0 %v1077_v14 }
 0x58d   : > { %1182 = vrot.lane.b32.xlu0 %v2612_v8, %s2197_s30 }
 0x59f   : > { %v913_v18 = vpop.xlane.xlu1 %912 }
 0x5a0   : > { %v914_v19 = vsub.f32 %v906_v7, %v913_v18 }
 0x5a2   : > { %v915_v20 = vmul.f32 1.442695, %v914_v19 }
 0x5a3   : > { %v925_v21 = vpop.permute.xlu1 %924 }
 0x5a4   : > { %1866 = vpow2.f32 %v915_v20  ;;  %v930_v22 = vsel %vm766_vm3, %v925_v21, 0 }
 0x5a5   : > { %1677 = vmatpush3.bf16.msra.mxu1 %v930_v22 }
 0x5a6   : > { %1682 = vmatprep.subr.bf16.mxu1 %v2193_v0 }
 0x5ae   : > { %v1867_v23 = vpop.eup %1866 }
 0x5af   : > { %v917_v25 = vsel %vm704_vm2, %v1867_v23, 0.0 }
 0x5b0   : > { %918 = vadd.xlane.f32.xlu0 %v917_v25 }
 0x604   : > { %v1079_v26 = vpop.xlane.xlu0 %1078 }
 0x605   : > { %1868 = vrcp.f32 %v1079_v26 }
 0x608   : > { %v1183_v8 = vpop.permute.xlu0 %1182 }
 0x609   : > { %v1188_v30 = vsel %vm704_vm2, %v1183_v8, 0 }
 0x60f   : > { %v1869_v27 = vpop.eup %1868 }
 0x610   : > { %v1081_v28 = vmul.f32 %v1869_v27, %v1865_v16 }
 0x612   : > { %v1082_v29 = vpack.c.bf16 %v1081_v28, %v1081_v28 }
 0x614   : > { %1697 = vmatmul.mubr.msk.bf16.vlgmr.msra.gmra.mrb[20].mxu0 %vm704_vm2, %v1082_v29 }
 0x615   : > { %1707 = vmatpush3.bf16.xpose.msra.mxu0 %v1188_v30  ;;  %1708 = vmatprep.mubr.msk.bf16.mxu0 %vm2194_vm0, %v2193_v0  ;;  %v1589_v30 = vld [vmem:[%s2849_s23] ss:$0 sm:$0xff] }
 0x61c   : > { %1709 = vmatmul.mubr.msk.bf16.vlgmr.msra.gmra.mrb[24].mxu0 %vm704_vm2, %v1181_v17 }
 0x63d   : > { %v919_v31 = vpop.xlane.xlu0 %918 }
 0x63e   : > { %1870 = vrcp.f32 %v919_v31 }
 0x648   : > { %v1871_v32 = vpop.eup %1870 }
 0x649   : > { %v921_v33 = vmul.f32 %v1871_v32, %v1867_v23  ;;  %v1590_v32 = vld [vmem:[%s2850_s29] ss:$0 sm:$0xff] }
 0x64b   : > { %v922_v34 = vpack.c.bf16 %v921_v33, %v921_v33 }
 0x64d   : > { %1679 = vmatmul.mubr.msk.bf16.vlgmr.msra.gmra.mrb[12].mxu1 %vm704_vm2, %v922_v34 }
 0x64e   : > { %1684 = vmatprep.mubr.msk.bf16.mxu1 %vm2194_vm0, %v2193_v0  ;;  %1683 = vmatpush3.bf16.msra.mxu1 %v978_v36 }
 0x64f   : > { %1700 = vmatprep.subr.bf16.mxu1 %v2193_v0 }
 0x6e7   : > { %v1125_v37 = vpop.f32.mrb[20].mxu0 }
 0x6e8   : > { %v1698_v38 = vpop.f32.mrb[21].mxu0 }
 0x6e9   : > { %v1128_v40 = vpop.f32.mrb[22].mxu0 }
 0x6ea   : > { %v1699_v41 = vpop.f32.mrb[23].mxu0 }
 0x6ef   : > { %v1224_v42 = vpop.f32.mrb[24].mxu0 }
 0x6f0   : > { %v1225_v43 = vadd.f32 %v1224_v42, %v2635_v24  ;;  %v1710_v44 = vpop.f32.mrb[25].mxu0  ;;  %v1131_v24 = vpack.c.bf16 %v1125_v37, %v1125_v37 }
 0x6f1   : > { %v1227_v45 = vpop.f32.mrb[26].mxu0 }
 0x6f2   : > { %v1711_v46 = vpop.f32.mrb[27].mxu0  ;;  %v1230_v47 = vsel %vm704_vm2, %v1225_v43, -inf }
 0x6f3   : > { %1231 = vmax.xlane.f32.xlu0 %v1230_v47 }
 0x720   : > { %v966_v49 = vpop.f32.mrb[12].mxu1 }
 0x721   : > { %v972_v50 = vpack.c.bf16 %v966_v49, %v966_v49  ;;  %v1680_v51 = vpop.f32.mrb[13].mxu1 }
 0x722   : > { %v969_v53 = vpop.f32.mrb[14].mxu1 }
 0x723   : > { %v1681_v54 = vpop.f32.mrb[15].mxu1  ;;  %1685 = vmatmul.mubr.msk.bf16.vlgmr.msra.gmra.mrb[8].mxu1 %vm704_vm2, %v972_v50 }
 0x724   : > { %1701 = vmatpush3.bf16.msra.mxu1 %v1137_v52  ;;  %1702 = vmatprep.mubr.msk.bf16.mxu1 %vm2194_vm0, %v2193_v0 }
 0x725   : > { %1712 = vmatprep.subr.bf16.mxu1 %v2193_v0 }
 0x72f   : > { %1703 = vmatmul.mubr.msk.bf16.vlgmr.msra.gmra.mrb[8].mxu1 %vm704_vm2, %v1131_v24 }
 0x730   : > { %1714 = vmatprep.mubr.msk.bf16.mxu1 %vm2194_vm0, %v2193_v0 }
 0x780   : > { %v1232_v55 = vpop.xlane.xlu0 %1231 }
 0x781   : > { %v1233_v56 = vsub.f32 %v1225_v43, %v1232_v55 }
 0x783   : > { %v1234_v57 = vmul.f32 1.442695, %v1233_v56 }
 0x785   : > { %1872 = vpow2.f32 %v1234_v57 }
 0x78f   : > { %v1873_v58 = vpop.eup %1872 }
 0x790   : > { %v1236_v59 = vsel %vm704_vm2, %v1873_v58, 0.0 }
 0x791   : > { %1237 = vadd.xlane.f32.xlu0 %v1236_v59 }
 0x7a7   : > { %1242 = vrot.lane.b32.xlu0 %v2640_v39, %s2197_s30  ;;  %s1379_s30 = scalar_lea.sflag [#allocation4], %s2556_s10 }
 0x81e   : > { %v1238_v60 = vpop.xlane.xlu0 %1237 }
 0x81f   : > { %1874 = vrcp.f32 %v1238_v60 }
 0x822   : > { %v1243_v61 = vpop.permute.xlu0 %1242 }
 0x823   : > { %v1248_v62 = vsel %vm766_vm3, %v1243_v61, 0 }
 0x824   : > { %1713 = vmatpush3.bf16.msra.mxu1 %v1248_v62 }
 0x825   : > { %1718 = vmatprep.subr.bf16.mxu1 %v2193_v0 }
 0x829   : > { %v1875_v63 = vpop.eup %1874 }
 0x82a   : > { %v1240_v2 = vmul.f32 %v1875_v63, %v1873_v58 }
 0x82c   : > { %v1241_v3 = vpack.c.bf16 %v1240_v2, %v1240_v2 }
 0x82e   : > { %1715 = vmatmul.mubr.msk.bf16.vlgmr.msra.gmra.mrb[16].mxu1 %vm704_vm2, %v1241_v3 }
 0x82f   : > { %1719 = vmatpush3.bf16.msra.mxu1 %v1296_v4  ;;  %1720 = vmatprep.mubr.msk.bf16.mxu1 %vm2194_vm0, %v2193_v0 }
 0x901   : > { %v1284_v39 = vpop.f32.mrb[16].mxu1 }
 0x902   : > { %v1290_v5 = vpack.c.bf16 %v1284_v39, %v1284_v39  ;;  %v1716_v7 = vpop.f32.mrb[17].mxu1 }
 0x903   : > { %v1287_v9 = vpop.f32.mrb[18].mxu1 }
 0x904   : > { %v1717_v10 = vpop.f32.mrb[19].mxu1  ;;  %1721 = vmatmul.mubr.msk.bf16.vlgmr.msra.gmra.mrb[8].mxu1 %vm704_vm2, %v1290_v5 }
 0x9d7   : > { %v1332_v12 = vpop.f32.mrb[8].mxu1 }
 0x9d8   : > { %v1724_v13 = vadd.f32 %v1332_v12, %v703_v11  ;;  %v1722_v15 = vpop.f32.mrb[9].mxu1 }
 0x9d9   : > { %v1335_v16 = vpop.f32.mrb[10].mxu1 }
 0x9da   : > { %v1723_v14 = vpop.f32.mrb[11].mxu1  ;;  %v1339_v17 = vsel %vm538_vm1, %v1724_v13, 0.0 }
 0x9db   : > { %1340 = vadd.xlane.f32.xlu1 %v1339_v17 }
 0xa68   : > { %v1341_v18 = vpop.xlane.xlu1 %1340 }
 0xa69   : > { %v1343_v19 = vmul.f32 0.03125, %v1341_v18 }
 0xa6b   : > { %v1344_v0 = vsub.f32 %v1724_v13, %v1343_v19 }
 0xa6d   : > { %v1345_v20 = vmul.f32 %v1344_v0, %v1344_v0 }
 0xa6f   : > { %v1346_v21 = vsel %vm538_vm1, %v1345_v20, 0.0 }
 0xa70   : > { %1347 = vadd.xlane.f32.xlu0 %v1346_v21 }
 0xafd   : > { %v1348_v22 = vpop.xlane.xlu0 %1347 }
 0xafe   : > { %v1350_v23 = vmul.f32 0.032258064, %v1348_v22 }
 0xb00   : > { %1876 = vrsqrt.f32 %v1350_v23  ;;  %vm1353_vm4 = vcmp.eq.f32.partialorder %v1350_v23, inf  ;;  %v1356_v26 = vand.u32 2147483648, %v1350_v23  ;;  %vm1355_vm5 = vcmp.eq.f32.partialorder %v1350_v23, 0.0 }
 0xb0a   : > { %v1877_v6 = vpop.eup %1876 }
 0xb0b   : > { %v1352_v25 = vmul.f32 %v1877_v6, %v1350_v23 }
 0xb0d   : > { %v1354_v27 = vsel %vm1353_vm4, %v1350_v23, %v1352_v25 }
 0xb0e   : > { %v1357_v28 = vsel %vm1355_vm5, %v1356_v26, %v1354_v27 }
 0xb0f   : > { %v1358_v8 = vmax.f32 %v1357_v28, 1e-06 }
 0xb11   : > { %1878 = vrcp.f32 %v1358_v8 }
 0xb1b   : > { %v1879_v29 = vpop.eup %1878 }
 0xb1c   : > { %v1360_v31 = vmul.f32 %v1879_v29, %v1344_v0 }
 0xb1e   : > { %v1368_v33 = vmul.f32 %v1589_v30, %v1360_v31 }
 0xb20   : > { %v1376_v34 = vadd.f32 %v1590_v32, %v1368_v33 }
 0xb22   : > { %1377 = vst.msk [vmem:[%s513_s5] sm:$0xff] %vm538_vm1, %v1376_v34 }
 0xb23   : > { %2097 = shalt.err (!%p2094_p9)
}
 0xb24   : > { %s2098_s10 = scalar_lea.hbm %s2727_s8, 128  ;;  %s2102_s20 = scalar_lea.hbm %s2851_s9, 256 }
 0xb25   : > { %p2099_p6 = scmp.ne.s32.totalorder %s2727_s8, %s2098_s10  ;;  %p2103_p0 = scmp.lt.u32.totalorder %s2727_s8, %s2851_s9 }
 0xb26   : > { %p2104_p1 = scmp.lt.u32.totalorder %s2102_s20, %s2098_s10  ;;  %p2106_p11 = scmp.lt.u32.totalorder %s2098_s10, %s2727_s8 }
 0xb27   : > { %p2100_p10 = pnand %p2099_p6, %p2852_p13 }
 0xb28   : > { %p2105_p8 = por %p2104_p1, %p2103_p0 }
 0xb29   : > { %p2101_p4 = pneg %p2100_p10 }
 0xb2a   : > { %p2107_p12 = por %p2106_p11, %p2105_p8 }
 0xb2c   : > { %p2108_p3 = pnand %p2107_p12, %p2101_p4 }
 0xb2e   : > { %2111 = shalt.err (!%p2108_p3)
}
 0xb2f   : > { %1757 = dma.vmem_to_hbm [thread:$0]  (%p2852_p13), %s2729_s28, 128, %s2727_s8, %s1379_s30  }
 0xb30 PF: > { %s2853_s5 = sld [smem:[#allocation21_spill]]  ;;  %s2854_s22 = sld [smem:[#allocation23_spill]] }
 0xb31   : > { %p2856_p2 = scmp.ge.s32.totalorder %s2182_s18, 2 }
 0xb36   : > { %s1405_s19 = sand.u32 1, %s2853_s5   ;;  %p2855_p5 = scmp.ne.s32.totalorder %s2854_s22, 0 }
 0xb37   : > { %s1406_s25 = scalar_lea.sflag [#allocation4], %s1405_s19 }
 0xb38   : > { %p1783_p7 = pnand %p2856_p2, %p2855_p5 }
 0xb3a   : > { %2157 = dma.done.wait (!%p1783_p7), %s1406_s25, 128  }
 0xb3b   : > { %2159 = vsyncadd (!%p1783_p7), %s1406_s25, 4294967168  ;;  %s31_s18 = sadd.s32 1, %s2182_s18   ;;  %s2857_s21 = smov %s2864_s13 }
 0xb3c   : > { %p28_p9 = scmp.ge.s32.totalorder %s31_s18, 4   ;;  %s2858_s13 = smov %s2166_s14 }
 0xb3d   : > { %s2859_s14 = smov %s2170_s15  ;;  %s2860_s15 = smov %s2483_s26 }
 0xb3e   : > { %s2861_s16 = smov %s2178_s17  ;;  %s2862_s17 = smov %s2857_s21 }
 0xb3f   :  { %30 = sbr.rel (!%p28_p9) target bundleno = 18 (0x12), region = 140 }
 0xb46   :  { %1411 = vsyncpa [#allocation3], 1 }
 0xb47   :  { %1413 = vsyncpa [#allocation3 + $0x1], 1 }
 0xb48   :  { %1414 = vsyncpa [#allocation6], 1 }
 0xb49   :  { %1415 = vsyncpa [#allocation9], 1 }
 0xb4a   :  { %1417 = vsyncpa [#allocation9 + $0x1], 1 }
 0xb4b   :  { %1418 = vsyncpa [#allocation12], 1 }
 0xb4c   :  { %1419 = vsyncpa [#allocation4], 1 }
 0xb4d   :  { %1421 = vsyncpa [#allocation4 + $0x1], 1 }

</bundles_post_ra>
